<compile_context>
chip_gen: v7x
topology: tpu7x:2x2x1
jax: 0.10.0
libtpu: 0.0.40
codegen_flags: <defaults>
</compile_context>

<pallas_src>
import functools

import jax
import jax.numpy as jnp
from jax.experimental import pallas as pl
from jax.experimental.pallas import tpu as pltpu

_BN_EPS = 1e-5


# ---------------------------------------------------------------------------
# Kernels
# ---------------------------------------------------------------------------
def _proj_bn_relu_kernel(x_ref, w_ref, scale_ref, shift_ref, out_ref):
    """Layer 0: ConvTranspose2d(nz, C, 4, 1, 0) on a 1x1 input == matmul.

    x_ref:     (TB, nz)
    w_ref:     (nz, 16*C)   weight rearranged to (ci, kh, kw, co), flattened
    scale_ref: (1, 16*C)    folded-BN scale, tiled over the 16 (kh,kw) taps
    shift_ref: (1, 16*C)    folded-BN shift, tiled over the 16 (kh,kw) taps
    out_ref:   (TB, 16*C)   flattened (kh, kw, co) output (lane-dense)
    """
    y = jnp.dot(x_ref[...], w_ref[...], preferred_element_type=jnp.float32)
    y = y * scale_ref[...] + shift_ref[...]
    out_ref[...] = jnp.maximum(y, 0.0)


def _deconv2x_kernel(xp_ref, w_ref, scale_ref, shift_ref, out_ref, *, act):
    """ConvTranspose2d(Cin, Cout, 4, stride=2, pad=1) + scale/shift + act.

    xp_ref:    (TB, H+2, W+2, Cin)  spatially zero-padded NHWC input tile
    w_ref:     (4, 4, Cin, Cout)    PyTorch weight transposed to (kh, kw, ci, co)
    scale_ref: (1, Cout), shift_ref: (1, Cout)
    out_ref:   (4, TB, H, W, Cout)  parity-packed: out[dh*2+dw, b, i, j]
                                    == y[b, 2i+dh, 2j+dw]
    """
    TB = xp_ref.shape[0]
    Cin = xp_ref.shape[3]
    H = out_ref.shape[2]
    W = out_ref.shape[3]
    Cout = out_ref.shape[4]

    scale = scale_ref[...]
    shift = shift_ref[...]

    for dh in range(2):
        for dw in range(2):
            acc = None
            for r in (dh, dh + 1):          # padded-input row offset
                for c in (dw, dw + 1):      # padded-input col offset
                    kh = 3 + dh - 2 * r     # kernel tap feeding this parity
                    kw = 3 + dw - 2 * c
                    xs = xp_ref[:, pl.ds(r, H), pl.ds(c, W), :]
                    xs = xs.reshape(TB * H * W, Cin)
                    wt = w_ref[kh, kw, :, :]
                    t = jnp.dot(xs, wt, preferred_element_type=jnp.float32)
                    acc = t if acc is None else acc + t
            y = acc * scale + shift
            if act == "relu":
                y = jnp.maximum(y, 0.0)
            else:  # "tanh"
                y = jnp.tanh(y)
            out_ref[dh * 2 + dw] = y.reshape(TB, H, W, Cout).astype(out_ref.dtype)


# ---------------------------------------------------------------------------
# Per-layer wrappers
# ---------------------------------------------------------------------------
def _proj_layer(x, w, scale, shift, *, batch_tile):
    B, nz = x.shape
    cout = w.shape[1]
    n_feat = 16 * cout
    wk = jnp.transpose(w, (0, 2, 3, 1)).reshape(nz, n_feat)   # (ci, kh, kw, co)
    scale_f = jnp.tile(scale, 16).reshape(1, n_feat)
    shift_f = jnp.tile(shift, 16).reshape(1, n_feat)
    tb = batch_tile

    out = pl.pallas_call(
        _proj_bn_relu_kernel,
        out_shape=jax.ShapeDtypeStruct((B, n_feat), jnp.float32),
        grid_spec=pltpu.PrefetchScalarGridSpec(
            num_scalar_prefetch=0,
            grid=(B // tb,),
            in_specs=[
                pl.BlockSpec((tb, nz), lambda i: (i, 0)),
                pl.BlockSpec((nz, n_feat), lambda i: (0, 0)),
                pl.BlockSpec((1, n_feat), lambda i: (0, 0)),
                pl.BlockSpec((1, n_feat), lambda i: (0, 0)),
            ],
            out_specs=pl.BlockSpec((tb, n_feat), lambda i: (i, 0)),
        ),
        compiler_params=pltpu.CompilerParams(
            dimension_semantics=("parallel",)),
    )(x, wk, scale_f, shift_f)
    return out.reshape(B, 4, 4, cout)        # NHWC


def _deconv2x_layer(x_nhwc, w, scale, shift, *, act, batch_tile):
    B, H, W, cin = x_nhwc.shape
    cout = w.shape[1]
    xp = jnp.pad(x_nhwc, ((0, 0), (1, 1), (1, 1), (0, 0)))
    wk = jnp.transpose(w, (2, 3, 0, 1))       # (kh, kw, ci, co)
    tb = batch_tile
    kernel = functools.partial(_deconv2x_kernel, act=act)

    out = pl.pallas_call(
        kernel,
        out_shape=jax.ShapeDtypeStruct((4, B, H, W, cout), jnp.float32),
        grid_spec=pltpu.PrefetchScalarGridSpec(
            num_scalar_prefetch=0,
            grid=(B // tb,),
            in_specs=[
                pl.BlockSpec((tb, H + 2, W + 2, cin), lambda i: (i, 0, 0, 0)),
                pl.BlockSpec((4, 4, cin, cout), lambda i: (0, 0, 0, 0)),
                pl.BlockSpec((1, cout), lambda i: (0, 0)),
                pl.BlockSpec((1, cout), lambda i: (0, 0)),
            ],
            out_specs=pl.BlockSpec((4, tb, H, W, cout),
                                   lambda i: (0, i, 0, 0, 0)),
        ),
        compiler_params=pltpu.CompilerParams(
            dimension_semantics=("parallel",)),
    )(xp, wk, scale.reshape(1, -1), shift.reshape(1, -1))

    # Interleave parities: (4, B, H, W, C) -> (B, 2H, 2W, C).
    out = out.reshape(2, 2, B, H, W, cout)
    out = jnp.transpose(out, (2, 3, 0, 4, 1, 5)).reshape(B, 2 * H, 2 * W, cout)
    return out


def _fold_bn(p):
    scale = p["gamma"] / jnp.sqrt(p["var"] + _BN_EPS)
    shift = p["beta"] - p["mean"] * scale
    return scale, shift


# ---------------------------------------------------------------------------
# Full Generator forward
# ---------------------------------------------------------------------------
def generator_forward(z, params, *, batch_tile=None):
    """z: (B, nz, 1, 1) fp32.  Returns (B, nc, 64, 64), matching Generator.forward."""
    B = z.shape[0]
    if batch_tile is None:
        batch_tile = B if B <= 8 else 8
    assert B % batch_tile == 0
    assert batch_tile == B or batch_tile % 8 == 0, \
        "batch_tile must equal B or be a multiple of 8 (fp32 sublane)"

    x = z.reshape(B, -1).astype(jnp.float32)                    # (B, nz)

    # Layer 0: projection + BN + ReLU -> (B, 4, 4, ngf*8)
    p = params[0]
    scale, shift = _fold_bn(p)
    h = _proj_layer(x, p["w"], scale, shift, batch_tile=batch_tile)

    # Layers 1-3: 2x-upsampling deconv + BN + ReLU.
    for p in params[1:4]:
        scale, shift = _fold_bn(p)
        h = _deconv2x_layer(h, p["w"], scale, shift, act="relu",
                            batch_tile=batch_tile)

    # Layer 4: 2x-upsampling deconv + Tanh (no BN).
    p = params[4]
    cout = p["w"].shape[1]
    ones = jnp.ones((cout,), jnp.float32)
    zeros = jnp.zeros((cout,), jnp.float32)
    h = _deconv2x_layer(h, p["w"], ones, zeros, act="tanh",
                        batch_tile=batch_tile)

    return jnp.transpose(h, (0, 3, 1, 2))                       # NCHW


# ---------------------------------------------------------------------------
# Parameter init (DCGAN-style) and pure-JAX reference
# ---------------------------------------------------------------------------
def init_generator_params(key, nz, ngf, nc):
    chans = [nz, ngf * 8, ngf * 4, ngf * 2, ngf, nc]
    params = []
    for li in range(5):
        cin, cout = chans[li], chans[li + 1]
        key, kw, km, kv, kg, kb = jax.random.split(key, 6)
        p = {"w": 0.02 * jax.random.normal(kw, (cin, cout, 4, 4), jnp.float32)}
        if li < 4:  # BatchNorm after every deconv except the last
            p["gamma"] = 1.0 + 0.1 * jax.random.normal(kg, (cout,), jnp.float32)
            p["beta"] = 0.1 * jax.random.normal(kb, (cout,), jnp.float32)
            p["mean"] = 0.05 * jax.random.normal(km, (cout,), jnp.float32)
            p["var"] = jax.random.uniform(kv, (cout,), jnp.float32, 0.5, 1.5)
        params.append(p)
    return params


def reference_forward(z, params):
    x = z
    for li, p in enumerate(params):
        w = p["w"]
        k = w.shape[2]
        stride, pad = (1, 0) if li == 0 else (2, 1)
        rhs = jnp.transpose(w, (1, 0, 2, 3))[:, :, ::-1, ::-1]   # OIHW, flipped
        x = jax.lax.conv_general_dilated(
            x, rhs, window_strides=(1, 1),
            padding=[(k - 1 - pad, k - 1 - pad)] * 2,
            lhs_dilation=(stride, stride),
            dimension_numbers=("NCHW", "OIHW", "NCHW"))
        if li < 4:
            scale = p["gamma"] / jnp.sqrt(p["var"] + _BN_EPS)
            shift = p["beta"] - p["mean"] * scale
            x = x * scale[None, :, None, None] + shift[None, :, None, None]
            x = jnp.maximum(x, 0.0)
        else:
            x = jnp.tanh(x)
    return x


if __name__ == "__main__":
    key = jax.random.PRNGKey(0)
    kp, kz = jax.random.split(key)

    # Small but architecture-faithful shapes.
    B, nz, ngf, nc = 2, 16, 8, 3
    params = init_generator_params(kp, nz, ngf, nc)
    z = jax.random.normal(kz, (B, nz, 1, 1), jnp.float32)

    out = generator_forward(z, params)            # (B, nc, 64, 64)
    out = jax.block_until_ready(out)
    assert out.shape == (B, nc, 64, 64)

    ref = reference_forward(z, params)
    err = float(jnp.max(jnp.abs(out - ref)))
    assert jnp.allclose(out, ref, atol=1e-4, rtol=1e-4), err

    print("KERNEL_OK")
</pallas_src>

<mosaic_0001>
module attributes {stable_mosaic.version = 11 : i64} {
  func.func @_proj_bn_relu_kernel(%arg0: i32, %arg1: memref<2x16xf32, #tpu.memory_space<vmem>>, %arg2: memref<16x1024xf32, #tpu.memory_space<vmem>>, %arg3: memref<1x1024xf32, #tpu.memory_space<vmem>>, %arg4: memref<1x1024xf32, #tpu.memory_space<vmem>>, %arg5: memref<2x1024xf32, #tpu.memory_space<vmem>>) attributes {dimension_semantics = [#tpu.dimension_semantics<parallel>], iteration_bounds = array<i64: 1>, scalar_prefetch = 0 : i64, scratch_operands = 0 : i64, tpu.core_type = #tpu.core_type<tc>, window_params = [{transform_indices = @transform_0, window_bounds = array<i64: 2, 16>}, {pipeline_mode = #tpu.pipeline_mode<synchronous>, transform_indices = @transform_1, window_bounds = array<i64: 16, 1024>}, {pipeline_mode = #tpu.pipeline_mode<synchronous>, transform_indices = @transform_2, window_bounds = array<i64: 1, 1024>}, {pipeline_mode = #tpu.pipeline_mode<synchronous>, transform_indices = @transform_3, window_bounds = array<i64: 1, 1024>}, {transform_indices = @transform_4, window_bounds = array<i64: 2, 1024>}]} {
    %c0 = arith.constant 0 : index
    %c0_0 = arith.constant 0 : index
    %0 = vector.load %arg1[%c0, %c0_0] : memref<2x16xf32, #tpu.memory_space<vmem>>, vector<2x16xf32>
    %c0_1 = arith.constant 0 : index
    %c0_2 = arith.constant 0 : index
    %1 = vector.load %arg2[%c0_1, %c0_2] : memref<16x1024xf32, #tpu.memory_space<vmem>>, vector<16x1024xf32>
    %cst = arith.constant dense<0.000000e+00> : vector<2x1024xf32>
    %2 = tpu.matmul %0, %1, %cst {dimension_numbers = #tpu.dot_dimension_numbers<[1], [0], [0], [1], [0, 0, 1, 1], [], []>} : vector<2x16xf32>, vector<16x1024xf32>, vector<2x1024xf32> -> vector<2x1024xf32>
    %c0_3 = arith.constant 0 : index
    %c0_4 = arith.constant 0 : index
    %3 = vector.load %arg3[%c0_3, %c0_4] : memref<1x1024xf32, #tpu.memory_space<vmem>>, vector<1x1024xf32>
    %4 = vector.broadcast %3 : vector<1x1024xf32> to vector<2x1024xf32>
    %5 = arith.mulf %2, %4 : vector<2x1024xf32>
    %c0_5 = arith.constant 0 : index
    %c0_6 = arith.constant 0 : index
    %6 = vector.load %arg4[%c0_5, %c0_6] : memref<1x1024xf32, #tpu.memory_space<vmem>>, vector<1x1024xf32>
    %7 = vector.broadcast %6 : vector<1x1024xf32> to vector<2x1024xf32>
    %8 = arith.addf %5, %7 : vector<2x1024xf32>
    %cst_7 = arith.constant 0.000000e+00 : f32
    %9 = vector.broadcast %cst_7 : f32 to vector<2x1024xf32>
    %10 = arith.maximumf %8, %9 : vector<2x1024xf32>
    %c0_8 = arith.constant 0 : index
    %c0_9 = arith.constant 0 : index
    %11 = vector.load %arg5[%c0_8, %c0_9] : memref<2x1024xf32, #tpu.memory_space<vmem>>, vector<2x1024xf32>
    tpu.vector_store %arg5[%c0_8, %c0_9], %10 {strides = array<i32>} : memref<2x1024xf32, #tpu.memory_space<vmem>>, vector<2x1024xf32>,
    return
  }
  func.func @transform_0(%arg0: i32) -> (i32, i32) {
    %c0_i32 = arith.constant 0 : i32
    %c0_i32_0 = arith.constant 0 : i32
    return %arg0, %c0_i32 : i32, i32
  }
  func.func @transform_1(%arg0: i32) -> (i32, i32) {
    %c0_i32 = arith.constant 0 : i32
    %c0_i32_0 = arith.constant 0 : i32
    %c0_i32_1 = arith.constant 0 : i32
    return %c0_i32, %c0_i32_0 : i32, i32
  }
  func.func @transform_2(%arg0: i32) -> (i32, i32) {
    %c0_i32 = arith.constant 0 : i32
    %c0_i32_0 = arith.constant 0 : i32
    %c0_i32_1 = arith.constant 0 : i32
    return %c0_i32, %c0_i32_0 : i32, i32
  }
  func.func @transform_3(%arg0: i32) -> (i32, i32) {
    %c0_i32 = arith.constant 0 : i32
    %c0_i32_0 = arith.constant 0 : i32
    %c0_i32_1 = arith.constant 0 : i32
    return %c0_i32, %c0_i32_0 : i32, i32
  }
  func.func @transform_4(%arg0: i32) -> (i32, i32) {
    %c0_i32 = arith.constant 0 : i32
    %c0_i32_0 = arith.constant 0 : i32
    return %arg0, %c0_i32 : i32, i32
  }
}

</mosaic_0001>

<bundles_post_ra>
// kernel: tpu_custom_call.1
= control target key start
LH: loop header
LB: loop body
LE: loop exit
PB: predicated region body
PF: predicated region fallthrough
CT: control target
= control target key end

     0   :  { %9 = vsyncpa [#allocation3], 0  ;;  %s740_s0 = inlined_call_operand.hbm [shape: f32[2,16], index: 0, kind: input, shape index: {}]   ;;  %s741_s1 = inlined_call_operand.hbm [shape: f32[16,1024], index: 1, kind: input, shape index: {}]   ;;  %s742_s2 = inlined_call_operand.hbm [shape: f32[1,1024], index: 2, kind: input, shape index: {}]   ;;  %s743_s3 = inlined_call_operand.vmem [shape: f32[1,1024], index: 3, kind: input, shape index: {}]   ;;  %s744_s4 = inlined_call_operand.hbm [shape: f32[2,1024], index: 4, kind: output, shape index: {}]  }
   0x1   :  { %10 = vsyncpa [#allocation6], 0 }
   0x2   :  { %11 = vsyncpa [#allocation4], 0  ;;  %s652_s15 = smov [#allocation5]   ;;  %s558_s19 = scalar_lea.hbm %s741_s1, 2048 }
   0x3   :  { %s27_s16 = sshll.u32 %s652_s15, 4  ;;  %p559_p0 = scmp.ne.s32.totalorder %s741_s1, %s558_s19  ;;  %s28_s16 = int_to_ptr.vmem [resolvable:$true] %s27_s16 }
   0x4   :  { %p562_p1 = scmp.lt.u32.totalorder %s558_s19, %s741_s1 }
   0x6   :  { %p564_p2 = pnand %p562_p1, %p559_p0 }
   0x8   :  { %567 = shalt.err (!%p564_p2)
}
   0x9   :  { %s568_s24 = scalar_lea.vmem %s28_s16, 2048  ;;  %p573_p4 = scmp.lt.s32.totalorder %s28_s16, %s28_s16 }
   0xa   :  { %p569_p3 = scmp.ne.s32.totalorder %s28_s16, %s568_s24  ;;  %p574_p5 = scmp.lt.s32.totalorder %s568_s24, %s568_s24 }
   0xc   :  { %p575_p6 = por %p574_p5, %p573_p4 }
   0xe   :  { %p576_p7 = pnand %p575_p6, %p569_p3 }
  0x10   :  { %579 = shalt.err (!%p576_p7)
}
  0x11   :  { %s653_s25 = smov 1024   ;;  %s654_s26 = smov 64  }
  0x12   :  { %33 = dma.hbm_to_vmem [thread:$0]  %s741_s1, 2048, %s28_s16, [#allocation6], %s653_s25, %s653_s25, %s654_s26  }
  0x13   :  { %s655_s29 = smov [#allocation2]   ;;  %s656_s5 = smov [#allocation7]  }
  0x14   :  { %s18_s30 = sshll.u32 %s655_s29, 4  ;;  %s40_s6 = sshll.u32 %s656_s5, 4  ;;  %s19_s30 = int_to_ptr.vmem [resolvable:$true] %s18_s30  ;;  %s41_s6 = int_to_ptr.vmem [resolvable:$true] %s40_s6 }
  0x15   :  { %s580_s9 = scalar_lea.hbm %s740_s0, 32 }
  0x16   :  { %p581_p8 = scmp.ne.s32.totalorder %s740_s0, %s580_s9  ;;  %p584_p9 = scmp.lt.u32.totalorder %s580_s9, %s740_s0 }
  0x18   :  { %p586_p10 = pnand %p584_p9, %p581_p8 }
  0x1a   :  { %589 = shalt.err (!%p586_p10)
}
  0x1b   :  { %s590_s1 = scalar_lea.vmem %s19_s30, 32  ;;  %p595_p12 = scmp.lt.s32.totalorder %s19_s30, %s19_s30 }
  0x1c   :  { %p591_p11 = scmp.ne.s32.totalorder %s19_s30, %s590_s1  ;;  %p596_p13 = scmp.lt.s32.totalorder %s590_s1, %s590_s1 }
  0x1e   :  { %p597_p0 = por %p596_p13, %p595_p12 }
  0x20   :  { %p598_p1 = pnand %p597_p0, %p591_p11 }
  0x22   :  { %601 = shalt.err (!%p598_p1)
}
  0x23   :  { %21 = dma.hbm_to_vmem [thread:$0]  %s740_s0, 32, %s19_s30, [#allocation3]  }
  0x24   :  { %s602_s18 = scalar_lea.hbm %s742_s2, 128 }
  0x25   :  { %p603_p2 = scmp.ne.s32.totalorder %s742_s2, %s602_s18  ;;  %p606_p3 = scmp.lt.u32.totalorder %s602_s18, %s742_s2 }
  0x27   :  { %p608_p4 = pnand %p606_p3, %p603_p2 }
  0x29   :  { %611 = shalt.err (!%p608_p4)
}
  0x2a   :  { %s612_s23 = scalar_lea.vmem %s41_s6, 128  ;;  %p617_p6 = scmp.lt.s32.totalorder %s41_s6, %s41_s6 }
  0x2b   :  { %p613_p5 = scmp.ne.s32.totalorder %s41_s6, %s612_s23  ;;  %p618_p7 = scmp.lt.s32.totalorder %s612_s23, %s612_s23 }
  0x2d   :  { %p619_p8 = por %p618_p7, %p617_p6 }
  0x2f   :  { %p620_p9 = pnand %p619_p8, %p613_p5 }
  0x31   :  { %623 = shalt.err (!%p620_p9)
}
  0x32   :  { %43 = dma.hbm_to_vmem [thread:$0]  %s742_s2, 128, %s41_s6, [#allocation6]  }
  0x33   :  { %646 = dma.done.wait [#allocation3], 32  }
  0x34   :  { %647 = vsyncadd [#allocation3], 4294967264 }
  0x35   :  { %648 = dma.done.wait [#allocation6], 2176  }
  0x36   :  { %649 = vsyncadd [#allocation6], 4294965120  ;;  %v657_v0 = vmov 0.0   ;;  %v57_v1 = vld [vmem:[#allocation5 + $0x8] sm:$0xff]  ;;  %v59_v3 = vld [vmem:[#allocation5 + $0x18] sm:$0xff]  ;;  %vm72_vm0 = vcmask 130048   ;;  %v362_v26 = vlaneseq }
  0x37   :  { %140 = vmatprep.mubr.f32.mxu0 %v657_v0  ;;  %211 = vmatprep.mubr.f32.mxu1 %v657_v0  ;;  %v65_v2 = vld [vmem:[#allocation5 + $0x48] sm:$0xff]  ;;  %v67_v5 = vld [vmem:[#allocation5 + $0x58] sm:$0xff]  ;;  %v56_v6 = vld [vmem:[#allocation5] sm:$0xff]  ;;  %v658_v35 = vmov 1983009808  }
  0x38   :  { %v534_v4 = vpack.c.bf16 %v65_v2, %v57_v1  ;;  %v64_v7 = vld [vmem:[#allocation5 + $0x40] sm:$0xff]  ;;  %v538_v8 = vpack.c.bf16 %v67_v5, %v59_v3  ;;  %v58_v10 = vld [vmem:[#allocation5 + $0x10] sm:$0xff]  ;;  %v55_v12 = vld [vmem:[#allocation2] sm:$0x3]  ;;  %v363_v27 = vshrl.u32 %v362_v26, 7  ;;  %v479_v36 = vunpack.c.l.s4 %v658_v35 }
  0x39   :  { %v536_v9 = vpack.c.bf16 %v64_v7, %v56_v6  ;;  %v66_v11 = vld [vmem:[#allocation5 + $0x50] sm:$0xff]  ;;  %v61_v14 = vld [vmem:[#allocation5 + $0x28] sm:$0xff]  ;;  %v63_v16 = vld [vmem:[#allocation5 + $0x38] sm:$0xff] }
  0x3a   :  { %535 = vmatprep.subr.bf16.mxu0 %v534_v4  ;;  %v540_v13 = vpack.c.bf16 %v66_v11, %v58_v10  ;;  %v69_v15 = vld [vmem:[#allocation5 + $0x68] sm:$0xff]  ;;  %539 = vmatprep.subr.bf16.mxu1 %v538_v8  ;;  %v71_v18 = vld [vmem:[#allocation5 + $0x78] sm:$0xff]  ;;  %v60_v19 = vld [vmem:[#allocation5 + $0x20] sm:$0xff]  ;;  %v364_v28 = vsub.s32 0, %v363_v27  ;;  %v372_v30 = vsub.s32 2, %v363_v27  ;;  %v368_v31 = vsub.s32 1, %v363_v27 }
  0x3b   :  { %537 = vmatpush1.bf16.msra.mxu0 %v536_v9  ;;  %v542_v17 = vpack.c.bf16 %v69_v15, %v61_v14  ;;  %v68_v20 = vld [vmem:[#allocation5 + $0x60] sm:$0xff]  ;;  %v546_v21 = vpack.c.bf16 %v71_v18, %v63_v16  ;;  %v62_v23 = vld [vmem:[#allocation5 + $0x30] sm:$0xff]  ;;  %v376_v32 = vsub.s32 3, %v363_v27  ;;  %v380_v37 = vsub.s32 4, %v363_v27 }
  0x3c   :  { %541 = vmatpush1.bf16.msra.mxu1 %v540_v13  ;;  %v544_v22 = vpack.c.bf16 %v68_v20, %v60_v19  ;;  %v70_v24 = vld [vmem:[#allocation5 + $0x70] sm:$0xff]  ;;  %v360_v29 = vld [vmem:[#allocation7] sm:$0xff]  ;;  %v388_v38 = vsub.s32 6, %v363_v27  ;;  %v384_v41 = vsub.s32 5, %v363_v27  ;;  %v392_v42 = vsub.s32 7, %v363_v27 }
  0x3d   :  { %543 = vmatprep.subr.bf16.mxu0 %v542_v17  ;;  %v548_v25 = vpack.c.bf16 %v70_v24, %v62_v23  ;;  %547 = vmatprep.subr.bf16.mxu1 %v546_v21  ;;  %v410_v33 = vld [vmem:[%s743_s3] sm:$0xff]  ;;  %v365_v34 = vrot.slane %v360_v29, %v364_v28  ;;  %v373_v39 = vrot.slane %v360_v29, %v372_v30  ;;  %v480_v52 = vunpack.c.0.s8 %v479_v36  ;;  %s659_s3 = smov [#allocation8]  }
  0x3e   :  { %530 = vmatmul.mubr.msk.f32.vlgmr.msra.gmra.mrb[0].mxu0 %vm72_vm0, %v55_v12  ;;  %v369_v40 = vrot.slane %v360_v29, %v368_v31  ;;  %v415_v43 = vrot.slane %v410_v33, %v364_v28  ;;  %v377_v44 = vrot.slane %v360_v29, %v376_v32  ;;  %v423_v46 = vrot.slane %v410_v33, %v372_v30  ;;  %s520_s26 = sshll.u32 %s659_s3, 4  ;;  %s521_s26 = int_to_ptr.vmem [resolvable:$true] %s520_s26 }
  0x3f   :  { %531 = vmatmul.mubr.msk.f32.vlgmr.msra.gmra.mrb[0].mxu1 %vm72_vm0, %v55_v12  ;;  %545 = vmatpush1.bf16.msra.mxu0 %v544_v22  ;;  %v419_v47 = vrot.slane %v410_v33, %v368_v31  ;;  %v427_v48 = vrot.slane %v410_v33, %v376_v32  ;;  %v381_v53 = vrot.slane %v360_v29, %v380_v37  ;;  %s624_s27 = scalar_lea.vmem %s521_s26, 256  ;;  %p629_p11 = scmp.lt.s32.totalorder %s521_s26, %s521_s26 }
  0x40   :  { %549 = vmatpush1.bf16.msra.mxu1 %v548_v25  ;;  %282 = vmatprep.mubr.f32.mxu0 %v657_v0  ;;  %v389_v54 = vrot.slane %v360_v29, %v388_v38  ;;  %v385_v58 = vrot.slane %v360_v29, %v384_v41  ;;  %v393_v59 = vrot.slane %v360_v29, %v392_v42  ;;  %p625_p10 = scmp.ne.s32.totalorder %s521_s26, %s624_s27  ;;  %p630_p12 = scmp.lt.s32.totalorder %s624_s27, %s624_s27 }
  0x41   :  { %353 = vmatprep.mubr.f32.mxu1 %v657_v0  ;;  %v431_v62 = vrot.slane %v410_v33, %v380_v37  ;;  %v439_v63 = vrot.slane %v410_v33, %v388_v38  ;;  %v435_v3 = vrot.slane %v410_v33, %v384_v41  ;;  %v443_v4 = vrot.slane %v410_v33, %v392_v42 }
  0x42   :  { %532 = vmatmul.mubr.msk.f32.vlgmr.msra.gmra.mrb[2].mxu0 %vm72_vm0, %v55_v12  ;;  %v483_v6 = vsub.s32 %v480_v52, %v363_v27  ;;  %p631_p13 = por %p630_p12, %p629_p11 }
  0x43   :  { %533 = vmatmul.mubr.msk.f32.vlgmr.msra.gmra.mrb[2].mxu1 %vm72_vm0, %v55_v12 }
  0x44   :  { %p632_p0 = pnand %p631_p13, %p625_p10 }
 0x111   :  { %v142_v45 = vpop.f32.mrb[0].mxu0 }
 0x112   :  { %v402_v49 = vmul.f32 %v365_v34, %v142_v45  ;;  %v213_v50 = vpop.f32.mrb[0].mxu1  ;;  %v144_v51 = vpop.f32.mrb[1].mxu0 }
 0x113   :  { %v404_v55 = vmul.f32 %v373_v39, %v213_v50  ;;  %v403_v56 = vmul.f32 %v369_v40, %v144_v51  ;;  %v215_v57 = vpop.f32.mrb[1].mxu1 }
 0x114   :  { %v452_v60 = vadd.f32 %v415_v43, %v402_v49  ;;  %v405_v61 = vmul.f32 %v377_v44, %v215_v57 }
 0x115   :  { %v454_v0 = vadd.f32 %v423_v46, %v404_v55  ;;  %v453_v1 = vadd.f32 %v419_v47, %v403_v56  ;;  %v284_v2 = vpop.f32.mrb[2].mxu0 }
 0x116   :  { %v460_v5 = vmax.f32 %v452_v60, 0.0  ;;  %v455_v7 = vadd.f32 %v427_v48, %v405_v61  ;;  %v406_v8 = vmul.f32 %v381_v53, %v284_v2  ;;  %v355_v9 = vpop.f32.mrb[2].mxu1  ;;  %v286_v10 = vpop.f32.mrb[3].mxu0 }
 0x117   :  { %v462_v11 = vmax.f32 %v454_v0, 0.0  ;;  %v461_v12 = vmax.f32 %v453_v1, 0.0  ;;  %v408_v13 = vmul.f32 %v389_v54, %v355_v9  ;;  %v407_v14 = vmul.f32 %v385_v58, %v286_v10  ;;  %v357_v15 = vpop.f32.mrb[3].mxu1 }
 0x118   :  { %v463_v16 = vmax.f32 %v455_v7, 0.0  ;;  %v456_v17 = vadd.f32 %v431_v62, %v406_v8  ;;  %v409_v18 = vmul.f32 %v393_v59, %v357_v15 }
 0x119   :  { %v476_v19 = vcombine.low %v460_v5, %v461_v12  ;;  %v458_v20 = vadd.f32 %v439_v63, %v408_v13  ;;  %v457_v21 = vadd.f32 %v435_v3, %v407_v14 }
 0x11a   :  { %v477_v22 = vcombine.low %v462_v11, %v463_v16  ;;  %v464_v23 = vmax.f32 %v456_v17, 0.0  ;;  %v459_v24 = vadd.f32 %v443_v4, %v409_v18 }
 0x11b   :  { %v484_v25 = vrot.slane %v476_v19, %v483_v6  ;;  %v466_v26 = vmax.f32 %v458_v20, 0.0  ;;  %v465_v27 = vmax.f32 %v457_v21, 0.0 }
 0x11c   :  { %v491_v28 = vrot.slane %v477_v22, %v483_v6  ;;  %v467_v29 = vmax.f32 %v459_v24, 0.0 }
 0x11d   :  { %v493_v30 = vcombine.low %v464_v23, %v465_v27 }
 0x11e   :  { %v494_v31 = vcombine.low %v466_v26, %v467_v29  ;;  %v492_v32 = vcombine.low %v484_v25, %v491_v28 }
 0x11f   :  { %v501_v33 = vrot.slane %v493_v30, %v483_v6 }
 0x120   :  { %v508_v34 = vrot.slane %v494_v31, %v483_v6  ;;  %512 = vst [vmem:[#allocation8] sm:$0xff] %v492_v32 }
 0x122   :  { %v509_v35 = vcombine.low %v501_v33, %v508_v34 }
 0x124   :  { %513 = vst [vmem:[#allocation8 + $0x8] sm:$0xff] %v509_v35 }
 0x125   :  { %635 = shalt.err (!%p632_p0)
}
 0x126   :  { %s636_s30 = scalar_lea.hbm %s744_s4, 256 }
 0x127   :  { %p637_p1 = scmp.ne.s32.totalorder %s744_s4, %s636_s30  ;;  %p640_p2 = scmp.lt.u32.totalorder %s636_s30, %s744_s4 }
 0x129   :  { %p642_p3 = pnand %p640_p2, %p637_p1 }
 0x12b   :  { %645 = shalt.err (!%p642_p3)
}
 0x12c   :  { %523 = dma.vmem_to_hbm [thread:$0]  %s521_s26, 256, %s744_s4, [#allocation4]  }
 0x12d   :  { %650 = dma.done.wait [#allocation4], 256  }
 0x12e   :  { %651 = vsyncadd [#allocation4], 4294967040 }
 0x12f   :  { %527 = vsyncpa [#allocation3], 1 }
 0x130   :  { %528 = vsyncpa [#allocation6], 1 }
 0x131   :  { %529 = vsyncpa [#allocation4], 1 }

</bundles_post_ra>
